<compile_context>
chip_gen: v7x
topology: tpu7x:2x2x1
jax: 0.10.0
libtpu: 0.0.40
codegen_flags: <defaults>
</compile_context>

<pallas_src>
import math
import functools

import jax
import jax.numpy as jnp
from jax.experimental import pallas as pl
from jax.experimental.pallas import tpu as pltpu

NEG_INF = -1e30


def _round_up(x, m):
    return ((x + m - 1) // m) * m


# ---------------------------------------------------------------------------
# Pallas kernels
# ---------------------------------------------------------------------------

def _mha_core(q, k, v, bias, n_head, head_dim):
    """q: [Sq, E] f32, k/v: [Sk, E] f32, bias: None or [*, Sk]-broadcastable f32.
    Returns lane-dense [Sq, E] f32 (heads concatenated)."""
    scale = 1.0 / math.sqrt(head_dim)
    qb = (q * scale).astype(jnp.bfloat16)          # fold scale into q (H*Sq*Dh muls)
    kb = k.astype(jnp.bfloat16)
    vb = v.astype(jnp.bfloat16)
    outs = []
    for h in range(n_head):
        sl = slice(h * head_dim, (h + 1) * head_dim)
        s = jnp.einsum("qd,kd->qk", qb[:, sl], kb[:, sl],
                       preferred_element_type=jnp.float32)            # [Sq, Sk]
        if bias is not None:
            s = s + bias
        m = jnp.max(s, axis=-1, keepdims=True)
        p = jnp.exp(s - m)
        l = jnp.sum(p, axis=-1, keepdims=True)
        o = jnp.dot(p.astype(jnp.bfloat16), vb[:, sl],
                    preferred_element_type=jnp.float32)                # [Sq, Dh]
        outs.append(o * pl.reciprocal(l, approx=True))                 # EUP reciprocal
    return jnp.concatenate(outs, axis=-1)                              # [Sq, E]


def _fused_attn_kernel(*refs, cross, n_head, head_dim, causal, has_kpm, has_bias):
    """Fused (QKV proj -> MHA -> out proj) for one batch element."""
    refs = list(refs)
    xq_ref = refs.pop(0)
    if cross:
        xkv_ref = refs.pop(0)
        wq_ref = refs.pop(0); bq_ref = refs.pop(0)
        wkv_ref = refs.pop(0); bkv_ref = refs.pop(0)
    else:
        wqkv_ref = refs.pop(0); bqkv_ref = refs.pop(0)
    wo_ref = refs.pop(0); bo_ref = refs.pop(0)
    kpm_ref = refs.pop(0) if has_kpm else None
    bias_ref = refs.pop(0) if has_bias else None
    o_ref = refs.pop(0)

    E = n_head * head_dim
    xq = xq_ref[0]                                                     # [Sq, E] bf16
    if cross:
        xkv = xkv_ref[0]                                               # [Sk, E] bf16
        q = jnp.dot(xq, wq_ref[...], preferred_element_type=jnp.float32) + bq_ref[...]
        kv = jnp.dot(xkv, wkv_ref[...], preferred_element_type=jnp.float32) + bkv_ref[...]
        k, v = kv[:, :E], kv[:, E:]
    else:
        qkv = jnp.dot(xq, wqkv_ref[...], preferred_element_type=jnp.float32) + bqkv_ref[...]
        q, k, v = qkv[:, :E], qkv[:, E:2 * E], qkv[:, 2 * E:]

    Sq, Sk = q.shape[0], k.shape[0]

    bias = None
    if has_kpm:
        bias = kpm_ref[0]                                              # [1, Sk] f32
    if causal:
        row = jax.lax.broadcasted_iota(jnp.int32, (Sq, Sk), 0)
        col = jax.lax.broadcasted_iota(jnp.int32, (Sq, Sk), 1)
        cm = jnp.where(col > row, NEG_INF, 0.0).astype(jnp.float32)
        bias = cm if bias is None else bias + cm
    if has_bias:
        ab = bias_ref[...]                                             # [Sq, Sk] f32
        bias = ab if bias is None else bias + ab

    o = _mha_core(q, k, v, bias, n_head, head_dim)                     # [Sq, E] f32
    out = jnp.dot(o.astype(jnp.bfloat16), wo_ref[...],
                  preferred_element_type=jnp.float32) + bo_ref[...]
    o_ref[0] = out.astype(o_ref.dtype)                                 # one lane-dense store


def fused_attention(x_q, x_kv, p, n_head, kpm_bias, attn_bias, causal):
    """x_q: [B,Sq,E] bf16, x_kv: [B,Sk,E] bf16, kpm_bias: None or [B,1,Sk] f32,
    attn_bias: None or [Sq,Sk] f32 -> [B,Sq,E] bf16."""
    B, Sq, E = x_q.shape
    Sk = x_kv.shape[1]
    cross = "wq" in p
    Dh = E // n_head

    args = [x_q]
    in_specs = [pl.BlockSpec((1, Sq, E), lambda b: (b, 0, 0))]
    if cross:
        args += [x_kv, p["wq"], p["bq"], p["wkv"], p["bkv"]]
        in_specs += [pl.BlockSpec((1, Sk, E), lambda b: (b, 0, 0)),
                     pl.BlockSpec((E, E), lambda b: (0, 0)),
                     pl.BlockSpec((1, E), lambda b: (0, 0)),
                     pl.BlockSpec((E, 2 * E), lambda b: (0, 0)),
                     pl.BlockSpec((1, 2 * E), lambda b: (0, 0))]
    else:
        args += [p["wqkv"], p["bqkv"]]
        in_specs += [pl.BlockSpec((E, 3 * E), lambda b: (0, 0)),
                     pl.BlockSpec((1, 3 * E), lambda b: (0, 0))]
    args += [p["wo"], p["bo"]]
    in_specs += [pl.BlockSpec((E, E), lambda b: (0, 0)),
                 pl.BlockSpec((1, E), lambda b: (0, 0))]
    if kpm_bias is not None:
        args.append(kpm_bias)
        in_specs.append(pl.BlockSpec((1, 1, Sk), lambda b: (b, 0, 0)))
    if attn_bias is not None:
        args.append(attn_bias)
        in_specs.append(pl.BlockSpec((Sq, Sk), lambda b: (0, 0)))

    return pl.pallas_call(
        functools.partial(_fused_attn_kernel, cross=cross, n_head=n_head,
                          head_dim=Dh, causal=causal,
                          has_kpm=kpm_bias is not None,
                          has_bias=attn_bias is not None),
        out_shape=jax.ShapeDtypeStruct((B, Sq, E), jnp.bfloat16),
        grid=(B,),
        in_specs=in_specs,
        out_specs=pl.BlockSpec((1, Sq, E), lambda b: (b, 0, 0)),
        compiler_params=pltpu.CompilerParams(dimension_semantics=("parallel",)),
    )(*args)


def _ffn_kernel(x_ref, w1_ref, b1_ref, w2_ref, b2_ref, o_ref):
    h = jnp.dot(x_ref[...], w1_ref[...], preferred_element_type=jnp.float32) + b1_ref[...]
    h = jnp.maximum(h, 0.0).astype(jnp.bfloat16)
    y = jnp.dot(h, w2_ref[...], preferred_element_type=jnp.float32) + b2_ref[...]
    o_ref[...] = y.astype(o_ref.dtype)


def ffn(x, p):
    """Fused Linear->ReLU->Linear; x: [M, E] bf16 -> [M, E] bf16.
    The [M, 4E] intermediate never leaves VMEM."""
    M, E = x.shape
    F = p["ff1_w"].shape[1]
    tm = min(512, _round_up(M, 16))
    Mp = _round_up(M, tm)
    xp = x if Mp == M else jnp.pad(x, ((0, Mp - M), (0, 0)))

    out = pl.pallas_call(
        _ffn_kernel,
        out_shape=jax.ShapeDtypeStruct((Mp, E), jnp.bfloat16),
        grid=(Mp // tm,),
        in_specs=[pl.BlockSpec((tm, E), lambda i: (i, 0)),
                  pl.BlockSpec((E, F), lambda i: (0, 0)),
                  pl.BlockSpec((1, F), lambda i: (0, 0)),
                  pl.BlockSpec((F, E), lambda i: (0, 0)),
                  pl.BlockSpec((1, E), lambda i: (0, 0))],
        out_specs=pl.BlockSpec((tm, E), lambda i: (i, 0)),
        compiler_params=pltpu.CompilerParams(dimension_semantics=("parallel",)),
    )(xp, p["ff1_w"], p["ff1_b"], p["ff2_w"], p["ff2_b"])
    return out if Mp == M else out[:M]


def _ln_res_kernel(x_ref, r_ref, g_ref, b_ref, o_ref, *, eps):
    x = x_ref[...].astype(jnp.float32) + r_ref[...].astype(jnp.float32)   # fused residual
    mean = jnp.mean(x, axis=-1, keepdims=True)
    xc = x - mean
    var = jnp.mean(xc * xc, axis=-1, keepdims=True)
    y = xc * jax.lax.rsqrt(var + eps)
    o_ref[...] = (y * g_ref[...] + b_ref[...]).astype(o_ref.dtype)


def layernorm_residual(x, res, g, b, eps=1e-5):
    """LayerNorm(x + res); x/res: [M, E] bf16, gamma/beta: [1, E] f32 -> [M, E] bf16."""
    M, E = x.shape
    tm = min(512, _round_up(M, 16))
    Mp = _round_up(M, tm)
    xp, rp = x, res
    if Mp != M:
        xp = jnp.pad(xp, ((0, Mp - M), (0, 0)))
        rp = jnp.pad(rp, ((0, Mp - M), (0, 0)))

    out = pl.pallas_call(
        functools.partial(_ln_res_kernel, eps=eps),
        out_shape=jax.ShapeDtypeStruct((Mp, E), jnp.bfloat16),
        grid=(Mp // tm,),
        in_specs=[pl.BlockSpec((tm, E), lambda i: (i, 0)),
                  pl.BlockSpec((tm, E), lambda i: (i, 0)),
                  pl.BlockSpec((1, E), lambda i: (0, 0)),
                  pl.BlockSpec((1, E), lambda i: (0, 0))],
        out_specs=pl.BlockSpec((tm, E), lambda i: (i, 0)),
        compiler_params=pltpu.CompilerParams(dimension_semantics=("parallel",)),
    )(xp, rp, g, b)
    return out if Mp == M else out[:M]


def _linear_kernel(x_ref, w_ref, b_ref, o_ref):
    # Output block is resident across the k axis: accumulate directly into it.
    @pl.when(pl.program_id(2) == 0)
    def _():
        o_ref[...] = jnp.zeros_like(o_ref)

    o_ref[...] += jnp.dot(x_ref[...], w_ref[...], preferred_element_type=jnp.float32)

    @pl.when(pl.program_id(2) == pl.num_programs(2) - 1)
    def _():
        o_ref[...] = o_ref[...] + b_ref[...]


def linear(x, w, b, n_out):
    """Tiled matmul (lm head). x: [M, K] bf16, w: [Kp, Np] bf16 (pre-transposed AND
    pre-padded at init), b: [1, Np] f32 -> [M, n_out] f32."""
    M, K = x.shape
    Kp, Np = w.shape
    tm = min(512, _round_up(M, 16))          # 16: bf16 packs two rows per sublane
    tn = min(512, Np)
    tk = min(512, Kp)
    Mp = _round_up(M, tm)
    xp = x
    if (Mp, Kp) != (M, K):
        xp = jnp.pad(xp, ((0, Mp - M), (0, Kp - K)))

    out = pl.pallas_call(
        _linear_kernel,
        out_shape=jax.ShapeDtypeStruct((Mp, Np), jnp.float32),
        grid=(Mp // tm, Np // tn, Kp // tk),
        in_specs=[pl.BlockSpec((tm, tk), lambda i, j, k: (i, k)),
                  pl.BlockSpec((tk, tn), lambda i, j, k: (k, j)),
                  pl.BlockSpec((1, tn), lambda i, j, k: (0, j))],
        out_specs=pl.BlockSpec((tm, tn), lambda i, j, k: (i, j)),
        compiler_params=pltpu.CompilerParams(
            dimension_semantics=("parallel", "parallel", "arbitrary")),
    )(xp, w, b)

    if (Mp, Np) != (M, n_out):
        out = out[:M, :n_out]
    return out


# ---------------------------------------------------------------------------
# Transformer building blocks (thin glue composing the fused Pallas kernels)
# ---------------------------------------------------------------------------

def encoder_layer(x, p, n_head, attn_bias, kpm_bias):
    """nn.TransformerEncoderLayer, post-norm, ReLU FF, eval mode. x: [B,S,E] bf16."""
    B, S, E = x.shape
    sa = fused_attention(x, x, p["self_attn"], n_head, kpm_bias, attn_bias, causal=False)
    x1 = layernorm_residual(x.reshape(B * S, E), sa.reshape(B * S, E),
                            p["ln1_g"], p["ln1_b"])
    h = ffn(x1, p)
    x2 = layernorm_residual(x1, h, p["ln2_g"], p["ln2_b"])
    return x2.reshape(B, S, E)


def decoder_layer(x, memory, p, n_head, tgt_bias, tgt_kpm, mem_bias, mem_kpm, causal):
    """nn.TransformerDecoderLayer, post-norm, ReLU FF, eval mode."""
    B, T, E = x.shape
    sa = fused_attention(x, x, p["self_attn"], n_head, tgt_kpm, tgt_bias, causal=causal)
    x1 = layernorm_residual(x.reshape(B * T, E), sa.reshape(B * T, E),
                            p["ln1_g"], p["ln1_b"]).reshape(B, T, E)
    ca = fused_attention(x1, memory, p["cross_attn"], n_head, mem_kpm, mem_bias,
                         causal=False)
    x2 = layernorm_residual(x1.reshape(B * T, E), ca.reshape(B * T, E),
                            p["ln2_g"], p["ln2_b"])
    h = ffn(x2, p)
    x3 = layernorm_residual(x2, h, p["ln3_g"], p["ln3_b"])
    return x3.reshape(B, T, E)


def positional_encoding(seq_len, d_model):
    pos = jnp.arange(seq_len, dtype=jnp.float32)[:, None]
    div = jnp.exp(jnp.arange(0, d_model, 2, dtype=jnp.float32) *
                  (-math.log(10000.0) / d_model))
    pe = jnp.zeros((seq_len, d_model), jnp.float32)
    pe = pe.at[:, 0::2].set(jnp.sin(pos * div))
    pe = pe.at[:, 1::2].set(jnp.cos(pos * div))
    return pe


def _kpm_bias(key_padding_mask):
    if key_padding_mask is None:
        return None
    B, S = key_padding_mask.shape
    return jnp.where(key_padding_mask, NEG_INF, 0.0).astype(jnp.float32).reshape(B, 1, S)


def _attn_bias(mask):
    if mask is None:
        return None
    return jnp.where(mask, NEG_INF, 0.0).astype(jnp.float32)


def mt_model_forward(params, src, tgt, src_mask, src_padding_mask, tgt_mask,
                     tgt_padding_mask, mem_padding_mask, memory_mask=None,
                     targets=None, *, n_head):
    B, T = tgt.shape
    S = src.shape[1]
    E = params["src_emb"].shape[1]
    emb_scale = math.sqrt(E)

    # tgt_mask is None -> causal mask is generated IN-KERNEL (no HBM materialization),
    # matching nn.Transformer.generate_square_subsequent_mask(T, dtype=bool).
    causal = tgt_mask is None

    # Mask biases built ONCE per forward, shared across all layers; None -> omitted.
    src_kpm = _kpm_bias(src_padding_mask)
    tgt_kpm = _kpm_bias(tgt_padding_mask)
    mem_kpm = _kpm_bias(mem_padding_mask)
    src_bias = _attn_bias(src_mask)
    tgt_bias = None if causal else _attn_bias(tgt_mask)
    mem_bias = _attn_bias(memory_mask)

    # ----- encode -----
    x = (jnp.take(params["src_emb"], src, axis=0) * emb_scale +
         positional_encoding(S, E)[None]).astype(jnp.bfloat16)
    for lp in params["enc_layers"]:
        x = encoder_layer(x, lp, n_head, src_bias, src_kpm)
    memory = x

    # ----- decode -----
    y = (jnp.take(params["tgt_emb"], tgt, axis=0) * emb_scale +
         positional_encoding(T, E)[None]).astype(jnp.bfloat16)
    for lp in params["dec_layers"]:
        y = decoder_layer(y, memory, lp, n_head, tgt_bias, tgt_kpm,
                          mem_bias, mem_kpm, causal=causal)

    V = params["lm_n"]
    logits = linear(y.reshape(B * T, E), params["lm_w"], params["lm_b"], V)
    logits = logits.reshape(B, T, V)

    # TODO(synk): cross-entropy loss (ignore_index=PAD) only when targets is provided.
    loss = None
    return logits, loss


# ---------------------------------------------------------------------------
# Deterministic parameter init: weights pre-transposed [in, out], pre-cast bf16,
# lm-head weights/bias pre-padded to tile multiples (done ONCE, never per call).
# ---------------------------------------------------------------------------

def _uniform(key, shape, bound):
    return jax.random.uniform(key, shape, jnp.float32, -bound, bound)


def _init_attn(key, E, fused_qkv):
    bound = 1.0 / math.sqrt(E)
    k1, k2, k3, k4, k5, k6 = jax.random.split(key, 6)
    if fused_qkv:
        p = {"wqkv": _uniform(k1, (E, 3 * E), bound).astype(jnp.bfloat16),
             "bqkv": _uniform(k2, (1, 3 * E), bound)}
    else:
        p = {"wq": _uniform(k1, (E, E), bound).astype(jnp.bfloat16),
             "bq": _uniform(k2, (1, E), bound),
             "wkv": _uniform(k5, (E, 2 * E), bound).astype(jnp.bfloat16),
             "bkv": _uniform(k6, (1, 2 * E), bound)}
    p["wo"] = _uniform(k3, (E, E), bound).astype(jnp.bfloat16)
    p["bo"] = _uniform(k4, (1, E), bound)
    return p


def _init_ff(key, E, F):
    k1, k2, k3, k4 = jax.random.split(key, 4)
    return {
        "ff1_w": _uniform(k1, (E, F), 1.0 / math.sqrt(E)).astype(jnp.bfloat16),
        "ff1_b": _uniform(k2, (1, F), 1.0 / math.sqrt(E)),
        "ff2_w": _uniform(k3, (F, E), 1.0 / math.sqrt(F)).astype(jnp.bfloat16),
        "ff2_b": _uniform(k4, (1, E), 1.0 / math.sqrt(F)),
    }


def _init_ln(E):
    return jnp.ones((1, E), jnp.float32), jnp.zeros((1, E), jnp.float32)


def _init_enc_layer(key, E, F):
    ka, kf = jax.random.split(key, 2)
    p = {"self_attn": _init_attn(ka, E, fused_qkv=True)}
    p.update(_init_ff(kf, E, F))
    p["ln1_g"], p["ln1_b"] = _init_ln(E)
    p["ln2_g"], p["ln2_b"] = _init_ln(E)
    return p


def _init_dec_layer(key, E, F):
    ka, kc, kf = jax.random.split(key, 3)
    p = {"self_attn": _init_attn(ka, E, fused_qkv=True),
         "cross_attn": _init_attn(kc, E, fused_qkv=False)}
    p.update(_init_ff(kf, E, F))
    p["ln1_g"], p["ln1_b"] = _init_ln(E)
    p["ln2_g"], p["ln2_b"] = _init_ln(E)
    p["ln3_g"], p["ln3_b"] = _init_ln(E)
    return p


def _pad_tiled_linear(w, b):
    """Pre-pad a pre-transposed [K, N] weight + [N] bias to tile multiples (once)."""
    K, N = w.shape
    Kp = _round_up(K, 128) if K <= 512 else _round_up(K, 512)
    Np = _round_up(N, 128) if N <= 512 else _round_up(N, 512)
    wp = jnp.pad(w, ((0, Kp - K), (0, Np - N))).astype(jnp.bfloat16)
    bp = jnp.pad(b.reshape(1, N).astype(jnp.float32), ((0, 0), (0, Np - N)))
    return wp, bp


def init_params(key, vocab_size, n_embd, n_ff, n_layer):
    initrange = 0.1
    keys = jax.random.split(key, 3 + 2 * n_layer)
    # nn.Linear(n_embd, vocab) weight is [V, E]; stored pre-transposed [E, V].
    lm_w = _uniform(keys[2], (n_embd, vocab_size), initrange)
    lm_b = jnp.zeros((vocab_size,), jnp.float32)
    lm_wp, lm_bp = _pad_tiled_linear(lm_w, lm_b)
    return {
        "src_emb": _uniform(keys[0], (vocab_size, n_embd), initrange),
        "tgt_emb": _uniform(keys[1], (vocab_size, n_embd), initrange),
        "lm_w": lm_wp, "lm_b": lm_bp, "lm_n": vocab_size,
        "enc_layers": [_init_enc_layer(keys[3 + i], n_embd, n_ff) for i in range(n_layer)],
        "dec_layers": [_init_dec_layer(keys[3 + n_layer + i], n_embd, n_ff)
                       for i in range(n_layer)],
    }


# ---------------------------------------------------------------------------
# Main
# ---------------------------------------------------------------------------

if __name__ == "__main__":
    # Config: vocab_size=32, n_embd=32, n_head=4, n_layer=2, n_ff=4*n_embd, dropout=0.0
    vocab_size, n_embd, n_head, n_layer = 32, 32, 4, 2
    n_ff = 4 * n_embd
    B, S_src, S_tgt = 2, 8, 8

    key = jax.random.PRNGKey(0)
    kp, ks, kt = jax.random.split(key, 3)
    params = init_params(kp, vocab_size, n_embd, n_ff, n_layer)

    src = jax.random.randint(ks, (B, S_src), 0, vocab_size, dtype=jnp.int32)
    tgt = jax.random.randint(kt, (B, S_tgt), 0, vocab_size, dtype=jnp.int32)

    # key_padding masks: True = pad (last two positions of second batch element padded)
    src_padding_mask = jnp.zeros((B, S_src), dtype=bool).at[1, -2:].set(True)
    tgt_padding_mask = jnp.zeros((B, S_tgt), dtype=bool).at[1, -2:].set(True)
    mem_padding_mask = src_padding_mask

    logits, loss = mt_model_forward(
        params, src, tgt,
        src_mask=None,
        src_padding_mask=src_padding_mask,
        tgt_mask=None,                      # causal mask generated in-kernel
        tgt_padding_mask=tgt_padding_mask,
        mem_padding_mask=mem_padding_mask,
        memory_mask=None,
        targets=None,
        n_head=n_head,
    )
    jax.block_until_ready(logits)
    assert logits.shape == (B, S_tgt, vocab_size), logits.shape
    assert loss is None
    assert bool(jnp.all(jnp.isfinite(logits)))
    print("KERNEL_OK")
</pallas_src>

<mosaic_0001>
module attributes {stable_mosaic.version = 11 : i64} {
  func.func @_fused_attn_kernel(%arg0: i32, %arg1: memref<1x8x32xbf16, #tpu.memory_space<vmem>>, %arg2: memref<32x96xbf16, #tpu.memory_space<vmem>>, %arg3: memref<1x96xf32, #tpu.memory_space<vmem>>, %arg4: memref<32x32xbf16, #tpu.memory_space<vmem>>, %arg5: memref<1x32xf32, #tpu.memory_space<vmem>>, %arg6: memref<1x1x8xf32, #tpu.memory_space<vmem>>, %arg7: memref<1x8x32xbf16, #tpu.memory_space<vmem>>) attributes {dimension_semantics = [#tpu.dimension_semantics<parallel>], iteration_bounds = array<i64: 2>, scalar_prefetch = 0 : i64, scratch_operands = 0 : i64, tpu.core_type = #tpu.core_type<tc>, window_params = [{transform_indices = @transform_0, window_bounds = array<i64: 1, 8, 32>}, {pipeline_mode = #tpu.pipeline_mode<synchronous>, transform_indices = @transform_1, window_bounds = array<i64: 32, 96>}, {pipeline_mode = #tpu.pipeline_mode<synchronous>, transform_indices = @transform_2, window_bounds = array<i64: 1, 96>}, {pipeline_mode = #tpu.pipeline_mode<synchronous>, transform_indices = @transform_3, window_bounds = array<i64: 32, 32>}, {pipeline_mode = #tpu.pipeline_mode<synchronous>, transform_indices = @transform_4, window_bounds = array<i64: 1, 32>}, {transform_indices = @transform_5, window_bounds = array<i64: 1, 1, 8>}, {transform_indices = @transform_6, window_bounds = array<i64: 1, 8, 32>}]} {
    %c0 = arith.constant 0 : index
    %c0_0 = arith.constant 0 : index
    %c0_1 = arith.constant 0 : index
    %0 = vector.load %arg1[%c0, %c0_0, %c0_1] : memref<1x8x32xbf16, #tpu.memory_space<vmem>>, vector<1x8x32xbf16>
    %1 = vector.shape_cast %0 : vector<1x8x32xbf16> to vector<8x32xbf16>
    %c0_2 = arith.constant 0 : index
    %c0_3 = arith.constant 0 : index
    %2 = vector.load %arg2[%c0_2, %c0_3] : memref<32x96xbf16, #tpu.memory_space<vmem>>, vector<32x96xbf16>
    %cst = arith.constant dense<0.000000e+00> : vector<8x96xf32>
    %3 = tpu.matmul %1, %2, %cst {dimension_numbers = #tpu.dot_dimension_numbers<[1], [0], [0], [1], [0, 0, 1, 1], [], []>} : vector<8x32xbf16>, vector<32x96xbf16>, vector<8x96xf32> -> vector<8x96xf32>
    %c0_4 = arith.constant 0 : index
    %c0_5 = arith.constant 0 : index
    %4 = vector.load %arg3[%c0_4, %c0_5] : memref<1x96xf32, #tpu.memory_space<vmem>>, vector<1x96xf32>
    %5 = vector.broadcast %4 : vector<1x96xf32> to vector<8x96xf32>
    %6 = arith.addf %3, %5 : vector<8x96xf32>
    %7 = vector.extract_strided_slice %6 {offsets = [0, 0], sizes = [8, 32], strides = [1, 1]} : vector<8x96xf32> to vector<8x32xf32>
    %8 = vector.extract_strided_slice %6 {offsets = [0, 32], sizes = [8, 32], strides = [1, 1]} : vector<8x96xf32> to vector<8x32xf32>
    %9 = vector.extract_strided_slice %6 {offsets = [0, 64], sizes = [8, 32], strides = [1, 1]} : vector<8x96xf32> to vector<8x32xf32>
    %c0_6 = arith.constant 0 : index
    %c0_7 = arith.constant 0 : index
    %c0_8 = arith.constant 0 : index
    %10 = vector.load %arg6[%c0_6, %c0_7, %c0_8] : memref<1x1x8xf32, #tpu.memory_space<vmem>>, vector<1x1x8xf32>
    %11 = vector.shape_cast %10 : vector<1x1x8xf32> to vector<1x8xf32>
    %cst_9 = arith.constant 0.353553385 : f32
    %12 = vector.broadcast %cst_9 : f32 to vector<8x32xf32>
    %13 = arith.mulf %7, %12 : vector<8x32xf32>
    %14 = arith.truncf %13 : vector<8x32xf32> to vector<8x32xbf16>
    %15 = arith.truncf %8 : vector<8x32xf32> to vector<8x32xbf16>
    %16 = arith.truncf %9 : vector<8x32xf32> to vector<8x32xbf16>
    %17 = vector.extract_strided_slice %14 {offsets = [0, 0], sizes = [8, 8], strides = [1, 1]} : vector<8x32xbf16> to vector<8x8xbf16>
    %18 = vector.extract_strided_slice %15 {offsets = [0, 0], sizes = [8, 8], strides = [1, 1]} : vector<8x32xbf16> to vector<8x8xbf16>
    "tpu.trace_start"() <{level = 10 : i32, message = "qd,kd->qk"}> : () -> ()
    %cst_10 = arith.constant dense<0.000000e+00> : vector<8x8xf32>
    %19 = tpu.matmul %17, %18, %cst_10 {dimension_numbers = #tpu.dot_dimension_numbers<[1], [1], [0], [0], [0, 0, 1, 0], [], []>} : vector<8x8xbf16>, vector<8x8xbf16>, vector<8x8xf32> -> vector<8x8xf32>
    "tpu.trace_stop"() : () -> ()
    %20 = vector.broadcast %11 : vector<1x8xf32> to vector<8x8xf32>
    %21 = arith.addf %19, %20 : vector<8x8xf32>
    %cst_11 = arith.constant dense<0xFF800000> : vector<8xf32>
    %22 = vector.multi_reduction <maximumf>, %21, %cst_11 [1] : vector<8x8xf32> to vector<8xf32>
    %23 = vector.shape_cast %22 : vector<8xf32> to vector<8x1xf32>
    %24 = vector.broadcast %23 : vector<8x1xf32> to vector<8x8xf32>
    %25 = arith.subf %21, %24 : vector<8x8xf32>
    %26 = math.exp %25 : vector<8x8xf32>
    %cst_12 = arith.constant dense<0.000000e+00> : vector<8xf32>
    %27 = vector.multi_reduction <add>, %26, %cst_12 [1] : vector<8x8xf32> to vector<8xf32>
    %28 = vector.shape_cast %27 : vector<8xf32> to vector<8x1xf32>
    %29 = arith.truncf %26 : vector<8x8xf32> to vector<8x8xbf16>
    %30 = vector.extract_strided_slice %16 {offsets = [0, 0], sizes = [8, 8], strides = [1, 1]} : vector<8x32xbf16> to vector<8x8xbf16>
    %cst_13 = arith.constant dense<0.000000e+00> : vector<8x8xf32>
    %31 = tpu.matmul %29, %30, %cst_13 {dimension_numbers = #tpu.dot_dimension_numbers<[1], [0], [0], [1], [0, 0, 1, 1], [], []>} : vector<8x8xbf16>, vector<8x8xbf16>, vector<8x8xf32> -> vector<8x8xf32>
    %32 = tpu.reciprocal %28 {approx = true} : vector<8x1xf32> -> vector<8x1xf32>
    %33 = vector.broadcast %32 : vector<8x1xf32> to vector<8x8xf32>
    %34 = arith.mulf %31, %33 : vector<8x8xf32>
    %35 = vector.extract_strided_slice %14 {offsets = [0, 8], sizes = [8, 8], strides = [1, 1]} : vector<8x32xbf16> to vector<8x8xbf16>
    %36 = vector.extract_strided_slice %15 {offsets = [0, 8], sizes = [8, 8], strides = [1, 1]} : vector<8x32xbf16> to vector<8x8xbf16>
    "tpu.trace_start"() <{level = 10 : i32, message = "qd,kd->qk"}> : () -> ()
    %cst_14 = arith.constant dense<0.000000e+00> : vector<8x8xf32>
    %37 = tpu.matmul %35, %36, %cst_14 {dimension_numbers = #tpu.dot_dimension_numbers<[1], [1], [0], [0], [0, 0, 1, 0], [], []>} : vector<8x8xbf16>, vector<8x8xbf16>, vector<8x8xf32> -> vector<8x8xf32>
    "tpu.trace_stop"() : () -> ()
    %38 = vector.broadcast %11 : vector<1x8xf32> to vector<8x8xf32>
    %39 = arith.addf %37, %38 : vector<8x8xf32>
    %cst_15 = arith.constant dense<0xFF800000> : vector<8xf32>
    %40 = vector.multi_reduction <maximumf>, %39, %cst_15 [1] : vector<8x8xf32> to vector<8xf32>
    %41 = vector.shape_cast %40 : vector<8xf32> to vector<8x1xf32>
    %42 = vector.broadcast %41 : vector<8x1xf32> to vector<8x8xf32>
    %43 = arith.subf %39, %42 : vector<8x8xf32>
    %44 = math.exp %43 : vector<8x8xf32>
    %cst_16 = arith.constant dense<0.000000e+00> : vector<8xf32>
    %45 = vector.multi_reduction <add>, %44, %cst_16 [1] : vector<8x8xf32> to vector<8xf32>
    %46 = vector.shape_cast %45 : vector<8xf32> to vector<8x1xf32>
    %47 = arith.truncf %44 : vector<8x8xf32> to vector<8x8xbf16>
    %48 = vector.extract_strided_slice %16 {offsets = [0, 8], sizes = [8, 8], strides = [1, 1]} : vector<8x32xbf16> to vector<8x8xbf16>
    %cst_17 = arith.constant dense<0.000000e+00> : vector<8x8xf32>
    %49 = tpu.matmul %47, %48, %cst_17 {dimension_numbers = #tpu.dot_dimension_numbers<[1], [0], [0], [1], [0, 0, 1, 1], [], []>} : vector<8x8xbf16>, vector<8x8xbf16>, vector<8x8xf32> -> vector<8x8xf32>
    %50 = tpu.reciprocal %46 {approx = true} : vector<8x1xf32> -> vector<8x1xf32>
    %51 = vector.broadcast %50 : vector<8x1xf32> to vector<8x8xf32>
    %52 = arith.mulf %49, %51 : vector<8x8xf32>
    %53 = vector.extract_strided_slice %14 {offsets = [0, 16], sizes = [8, 8], strides = [1, 1]} : vector<8x32xbf16> to vector<8x8xbf16>
    %54 = vector.extract_strided_slice %15 {offsets = [0, 16], sizes = [8, 8], strides = [1, 1]} : vector<8x32xbf16> to vector<8x8xbf16>
    "tpu.trace_start"() <{level = 10 : i32, message = "qd,kd->qk"}> : () -> ()
    %cst_18 = arith.constant dense<0.000000e+00> : vector<8x8xf32>
    %55 = tpu.matmul %53, %54, %cst_18 {dimension_numbers = #tpu.dot_dimension_numbers<[1], [1], [0], [0], [0, 0, 1, 0], [], []>} : vector<8x8xbf16>, vector<8x8xbf16>, vector<8x8xf32> -> vector<8x8xf32>
    "tpu.trace_stop"() : () -> ()
    %56 = vector.broadcast %11 : vector<1x8xf32> to vector<8x8xf32>
    %57 = arith.addf %55, %56 : vector<8x8xf32>
    %cst_19 = arith.constant dense<0xFF800000> : vector<8xf32>
    %58 = vector.multi_reduction <maximumf>, %57, %cst_19 [1] : vector<8x8xf32> to vector<8xf32>
    %59 = vector.shape_cast %58 : vector<8xf32> to vector<8x1xf32>
    %60 = vector.broadcast %59 : vector<8x1xf32> to vector<8x8xf32>
    %61 = arith.subf %57, %60 : vector<8x8xf32>
    %62 = math.exp %61 : vector<8x8xf32>
    %cst_20 = arith.constant dense<0.000000e+00> : vector<8xf32>
    %63 = vector.multi_reduction <add>, %62, %cst_20 [1] : vector<8x8xf32> to vector<8xf32>
    %64 = vector.shape_cast %63 : vector<8xf32> to vector<8x1xf32>
    %65 = arith.truncf %62 : vector<8x8xf32> to vector<8x8xbf16>
    %66 = vector.extract_strided_slice %16 {offsets = [0, 16], sizes = [8, 8], strides = [1, 1]} : vector<8x32xbf16> to vector<8x8xbf16>
    %cst_21 = arith.constant dense<0.000000e+00> : vector<8x8xf32>
    %67 = tpu.matmul %65, %66, %cst_21 {dimension_numbers = #tpu.dot_dimension_numbers<[1], [0], [0], [1], [0, 0, 1, 1], [], []>} : vector<8x8xbf16>, vector<8x8xbf16>, vector<8x8xf32> -> vector<8x8xf32>
    %68 = tpu.reciprocal %64 {approx = true} : vector<8x1xf32> -> vector<8x1xf32>
    %69 = vector.broadcast %68 : vector<8x1xf32> to vector<8x8xf32>
    %70 = arith.mulf %67, %69 : vector<8x8xf32>
    %71 = vector.extract_strided_slice %14 {offsets = [0, 24], sizes = [8, 8], strides = [1, 1]} : vector<8x32xbf16> to vector<8x8xbf16>
    %72 = vector.extract_strided_slice %15 {offsets = [0, 24], sizes = [8, 8], strides = [1, 1]} : vector<8x32xbf16> to vector<8x8xbf16>
    "tpu.trace_start"() <{level = 10 : i32, message = "qd,kd->qk"}> : () -> ()
    %cst_22 = arith.constant dense<0.000000e+00> : vector<8x8xf32>
    %73 = tpu.matmul %71, %72, %cst_22 {dimension_numbers = #tpu.dot_dimension_numbers<[1], [1], [0], [0], [0, 0, 1, 0], [], []>} : vector<8x8xbf16>, vector<8x8xbf16>, vector<8x8xf32> -> vector<8x8xf32>
    "tpu.trace_stop"() : () -> ()
    %74 = vector.broadcast %11 : vector<1x8xf32> to vector<8x8xf32>
    %75 = arith.addf %73, %74 : vector<8x8xf32>
    %cst_23 = arith.constant dense<0xFF800000> : vector<8xf32>
    %76 = vector.multi_reduction <maximumf>, %75, %cst_23 [1] : vector<8x8xf32> to vector<8xf32>
    %77 = vector.shape_cast %76 : vector<8xf32> to vector<8x1xf32>
    %78 = vector.broadcast %77 : vector<8x1xf32> to vector<8x8xf32>
    %79 = arith.subf %75, %78 : vector<8x8xf32>
    %80 = math.exp %79 : vector<8x8xf32>
    %cst_24 = arith.constant dense<0.000000e+00> : vector<8xf32>
    %81 = vector.multi_reduction <add>, %80, %cst_24 [1] : vector<8x8xf32> to vector<8xf32>
    %82 = vector.shape_cast %81 : vector<8xf32> to vector<8x1xf32>
    %83 = arith.truncf %80 : vector<8x8xf32> to vector<8x8xbf16>
    %84 = vector.extract_strided_slice %16 {offsets = [0, 24], sizes = [8, 8], strides = [1, 1]} : vector<8x32xbf16> to vector<8x8xbf16>
    %cst_25 = arith.constant dense<0.000000e+00> : vector<8x8xf32>
    %85 = tpu.matmul %83, %84, %cst_25 {dimension_numbers = #tpu.dot_dimension_numbers<[1], [0], [0], [1], [0, 0, 1, 1], [], []>} : vector<8x8xbf16>, vector<8x8xbf16>, vector<8x8xf32> -> vector<8x8xf32>
    %86 = tpu.reciprocal %82 {approx = true} : vector<8x1xf32> -> vector<8x1xf32>
    %87 = vector.broadcast %86 : vector<8x1xf32> to vector<8x8xf32>
    %88 = arith.mulf %85, %87 : vector<8x8xf32>
    %89 = tpu.concatenate %34, %52, %70, %88 in 1 : vector<8x8xf32>, vector<8x8xf32>, vector<8x8xf32>, vector<8x8xf32> -> vector<8x32xf32>
    %90 = arith.truncf %89 : vector<8x32xf32> to vector<8x32xbf16>
    %c0_26 = arith.constant 0 : index
    %c0_27 = arith.constant 0 : index
    %91 = vector.load %arg4[%c0_26, %c0_27] : memref<32x32xbf16, #tpu.memory_space<vmem>>, vector<32x32xbf16>
    %cst_28 = arith.constant dense<0.000000e+00> : vector<8x32xf32>
    %92 = tpu.matmul %90, %91, %cst_28 {dimension_numbers = #tpu.dot_dimension_numbers<[1], [0], [0], [1], [0, 0, 1, 1], [], []>} : vector<8x32xbf16>, vector<32x32xbf16>, vector<8x32xf32> -> vector<8x32xf32>
    %c0_29 = arith.constant 0 : index
    %c0_30 = arith.constant 0 : index
    %93 = vector.load %arg5[%c0_29, %c0_30] : memref<1x32xf32, #tpu.memory_space<vmem>>, vector<1x32xf32>
    %94 = vector.broadcast %93 : vector<1x32xf32> to vector<8x32xf32>
    %95 = arith.addf %92, %94 : vector<8x32xf32>
    %96 = arith.truncf %95 : vector<8x32xf32> to vector<8x32xbf16>
    %c0_31 = arith.constant 0 : index
    %c0_32 = arith.constant 0 : index
    %c0_33 = arith.constant 0 : index
    %97 = vector.load %arg7[%c0_31, %c0_32, %c0_33] : memref<1x8x32xbf16, #tpu.memory_space<vmem>>, vector<1x8x32xbf16>
    %98 = vector.shape_cast %97 : vector<1x8x32xbf16> to vector<8x32xbf16>
    %99 = vector.shape_cast %96 : vector<8x32xbf16> to vector<1x8x32xbf16>
    tpu.vector_store %arg7[%c0_31, %c0_32, %c0_33], %99 {strides = array<i32>} : memref<1x8x32xbf16, #tpu.memory_space<vmem>>, vector<1x8x32xbf16>,
    return
  }
  func.func @transform_0(%arg0: i32) -> (i32, i32, i32) {
    %c0_i32 = arith.constant 0 : i32
    %c0_i32_0 = arith.constant 0 : i32
    %c0_i32_1 = arith.constant 0 : i32
    return %arg0, %c0_i32, %c0_i32_0 : i32, i32, i32
  }
  func.func @transform_1(%arg0: i32) -> (i32, i32) {
    %c0_i32 = arith.constant 0 : i32
    %c0_i32_0 = arith.constant 0 : i32
    %c0_i32_1 = arith.constant 0 : i32
    return %c0_i32, %c0_i32_0 : i32, i32
  }
  func.func @transform_2(%arg0: i32) -> (i32, i32) {
    %c0_i32 = arith.constant 0 : i32
    %c0_i32_0 = arith.constant 0 : i32
    %c0_i32_1 = arith.constant 0 : i32
    return %c0_i32, %c0_i32_0 : i32, i32
  }
  func.func @transform_3(%arg0: i32) -> (i32, i32) {
    %c0_i32 = arith.constant 0 : i32
    %c0_i32_0 = arith.constant 0 : i32
    %c0_i32_1 = arith.constant 0 : i32
    return %c0_i32, %c0_i32_0 : i32, i32
  }
  func.func @transform_4(%arg0: i32) -> (i32, i32) {
    %c0_i32 = arith.constant 0 : i32
    %c0_i32_0 = arith.constant 0 : i32
    %c0_i32_1 = arith.constant 0 : i32
    return %c0_i32, %c0_i32_0 : i32, i32
  }
  func.func @transform_5(%arg0: i32) -> (i32, i32, i32) {
    %c0_i32 = arith.constant 0 : i32
    %c0_i32_0 = arith.constant 0 : i32
    %c0_i32_1 = arith.constant 0 : i32
    return %arg0, %c0_i32, %c0_i32_0 : i32, i32, i32
  }
  func.func @transform_6(%arg0: i32) -> (i32, i32, i32) {
    %c0_i32 = arith.constant 0 : i32
    %c0_i32_0 = arith.constant 0 : i32
    %c0_i32_1 = arith.constant 0 : i32
    return %arg0, %c0_i32, %c0_i32_0 : i32, i32, i32
  }
}

</mosaic_0001>

<bundles_post_ra>
// kernel: tpu_custom_call.1
= control target key start
LH: loop header
LB: loop body
LE: loop exit
PB: predicated region body
PF: predicated region fallthrough
CT: control target
= control target key end

     0   :  { %11 = vsyncpa [#allocation3], 0  ;;  %s1782_s0 = inlined_call_operand.hbm [shape: bf16[2,8,32], index: 0, kind: input, shape index: {}]   ;;  %s1783_s1 = inlined_call_operand.hbm [shape: bf16[32,96], index: 1, kind: input, shape index: {}]   ;;  %s1784_s2 = inlined_call_operand.vmem [shape: f32[1,96], index: 2, kind: input, shape index: {}]   ;;  %s1785_s3 = inlined_call_operand.hbm [shape: bf16[32,32], index: 3, kind: input, shape index: {}]   ;;  %s1786_s4 = inlined_call_operand.vmem [shape: f32[1,32], index: 4, kind: input, shape index: {}]   ;;  %s1787_s5 = inlined_call_operand.vmem [shape: f32[2,1,8], index: 5, kind: input, shape index: {}]   ;;  %s1788_s6 = inlined_call_operand.hbm [shape: bf16[2,8,32], index: 6, kind: output, shape index: {}]  }
   0x1   :  { %13 = vsyncpa [#allocation3 + $0x1], 0 }
   0x2   :  { %14 = vsyncpa [#allocation6], 0 }
   0x3   :  { %15 = vsyncpa [#allocation4], 0 }
   0x4   :  { %17 = vsyncpa [#allocation4 + $0x1], 0  ;;  %s1469_s21 = smov 0   ;;  %s1471_s22 = smov 0  }
   0x5   :  { %s1473_s23 = smov 0   ;;  %s1475_s24 = smov 0  }
   0x6 LB: > { %s1490_s25 = sadd.s32 4294967295, %s1410_s24   ;;  %s1030_s26 = sadd.s32 4294967294, %s1410_s24   ;;  %s1410_s24 = sphi %s1475_s24, %s1808_s24   ;;  %s1406_s23 = sphi %s1473_s23, %s1807_s23   ;;  %s1402_s22 = sphi %s1471_s22, %s1806_s22   ;;  %s1398_s21 = sphi %s1469_s21, %s1805_s21  }
   0x7   : > { %p43_p0 = scmp.ne.s32.totalorder %s1402_s22, %s1398_s21  ;;  %p1789_p1 = scmp.eq.s32.totalorder %s1490_s25, 0 }
   0x8   : > { %p183_p3 = scmp.eq.s32.totalorder %s1030_s26, 1  ;;  %p1031_p5 = scmp.ge.s32.totalorder %s1410_s24, 1 }
   0x9   : > { %p1499_p4 = por %p1789_p1, %p43_p0  ;;  %p190_p7 = scmp.lt.s32.totalorder %s1410_s24, 3 }
   0xa   : > { %p1504_p6 = por %p183_p3, %p43_p0  ;;  %s1412_s30 = smov [#allocation5]  }
   0xb   : > { %s1792_s27 = scalar_select %p1499_p4, 1, 0 }
   0xc   : > { %s1793_s28 = scalar_select %p1504_p6, 1, 0 }
   0xd   : > { %p1509_p8 = pnand %p1031_p5, %p190_p7  ;;  %s202_s7 = sshll.u32 %s1412_s30, 4  ;;  %s1513_s7 = int_to_ptr.vmem [resolvable:$true] %s202_s7 }
   0xe   : > { %s1413_s9 = smov [#allocation7]   ;;  %s1254_s13 = scalar_lea.hbm %s1783_s1, 256 }
   0xf   : > { %p1161_p9 = pneg %p1509_p8  ;;  %s218_s10 = sshll.u32 %s1413_s9, 4  ;;  %s1524_s10 = int_to_ptr.vmem [resolvable:$true] %s218_s10 }
  0x10   : > { %p1255_p12 = scmp.ne.s32.totalorder %s1783_s1, %s1254_s13  ;;  %p1261_p5 = scmp.lt.u32.totalorder %s1254_s13, %s1783_s1 }
  0x11   : > { %p1520_p11 = pnand %p1161_p9, %p1789_p1 }
  0x13   : > { %p1256_p13 = pneg %p1520_p11 }
  0x15   : > { %p1257_p0 = pnand %p1256_p13, %p1255_p12 }
  0x17   : > { %p1258_p3 = pneg %p1257_p0 }
  0x19   : > { %p1263_p7 = pnand %p1261_p5, %p1258_p3 }
  0x1b   : > { %1266 = shalt.err (!%p1263_p7)
}
  0x1c   : > { %s1267_s18 = scalar_lea.vmem %s1513_s7, 256  ;;  %p1275_p2 = scmp.lt.s32.totalorder %s1513_s7, %s1513_s7 }
  0x1d   : > { %p1268_p9 = scmp.ne.s32.totalorder %s1513_s7, %s1267_s18  ;;  %p1276_p12 = scmp.lt.s32.totalorder %s1267_s18, %s1267_s18 }
  0x1f   : > { %p1270_p10 = pnand %p1268_p9, %p1256_p13  ;;  %p1277_p0 = por %p1276_p12, %p1275_p2 }
  0x21   : > { %p1271_p1 = pneg %p1270_p10 }
  0x23   : > { %p1278_p6 = pnand %p1277_p0, %p1271_p1 }
  0x25   : > { %1281 = shalt.err (!%p1278_p6)
}
  0x26   : > { %s1414_s19 = smov 64   ;;  %s1415_s20 = smov 4  }
  0x27   : > { %1164 = dma.hbm_to_vmem [thread:$0]  (!%p1520_p11), %s1783_s1, 256, %s1513_s7, [#allocation6], %s1414_s19, %s1414_s19, %s1415_s20  }
  0x28   : > { %s1282_s12 = scalar_lea.hbm %s1785_s3, 256 }
  0x29   : > { %p1283_p2 = scmp.ne.s32.totalorder %s1785_s3, %s1282_s12  ;;  %p1289_p10 = scmp.lt.u32.totalorder %s1282_s12, %s1785_s3 }
  0x2b   : > { %p1285_p1 = pnand %p1283_p2, %p1256_p13 }
  0x2d   : > { %p1286_p6 = pneg %p1285_p1 }
  0x2f   : > { %p1291_p3 = pnand %p1289_p10, %p1286_p6 }
  0x31   : > { %1294 = shalt.err (!%p1291_p3)
}
  0x32   : > { %s1295_s7 = scalar_lea.vmem %s1524_s10, 256  ;;  %p1303_p12 = scmp.lt.s32.totalorder %s1524_s10, %s1524_s10 }
  0x33   : > { %p1296_p5 = scmp.ne.s32.totalorder %s1524_s10, %s1295_s7  ;;  %p1304_p0 = scmp.lt.s32.totalorder %s1295_s7, %s1295_s7 }
  0x35   : > { %p1298_p7 = pnand %p1296_p5, %p1256_p13  ;;  %p1305_p2 = por %p1304_p0, %p1303_p12 }
  0x37   : > { %p1299_p9 = pneg %p1298_p7 }
  0x39   : > { %p1306_p1 = pnand %p1305_p2, %p1299_p9 }
  0x3b   : > { %1309 = shalt.err (!%p1306_p1)
}
  0x3c   : > { %1167 = dma.hbm_to_vmem [thread:$0]  (!%p1520_p11), %s1785_s3, 256, %s1524_s10, [#allocation6], %s1414_s19, %s1414_s19, %s1415_s20  }
  0x3d   : > { %s1579_s26 = sadd.s32 1, %s1410_s24   ;;  %s30_s8 = sadd.s32 1, %s1406_s23 }
  0x3e   : > { %s27_s30 = ssub.s32 %s1410_s24, %s1579_s26  ;;  %p37_p13 = scmp.ne.s32.totalorder %s1406_s23, %s1402_s22 }
  0x3f   : > { %p28_p6 = scmp.eq.s32.totalorder %s27_s30, 0  ;;  %p38_p10 = scmp.eq.s32.totalorder %s1410_s24, 0 }
  0x40   : > { %p1796_p3 = scmp.eq.s32.totalorder %s1490_s25, 1  ;;  %p1178_p7 = scmp.lt.s32.totalorder %s1410_s24, 2 }
  0x41   : > { %s1595_s11 = scalar_select %p28_p6, %s1406_s23, %s30_s8  }
  0x42   : > { %p1589_p5 = por %p1796_p3, %p37_p13  ;;  %p39_p9 = por %p38_p10, %p37_p13 }
  0x43   : > { %s235_s12 = sand.u32 1, %s1406_s23   ;;  %s1036_s10 = sshll.u32 %s1410_s24, 6 }
  0x44   : > { %s1797_s9 = scalar_select %p1589_p5, 1, 0 }
  0x45   : > { %s1035_s13 = sshll.u32 %s235_s12, 2  ;;  %s1602_s14 = scalar_lea.hbm %s1782_s0, %s1036_s10 }
  0x46   : > { %s239_s15 = scalar_lea.vmem [#allocation2], %s1035_s13  ;;  %p1606_p11 = pnand %p1178_p7, %p39_p9 }
  0x47   : > { %s246_s16 = sshll.u32 %s239_s15, 4  ;;  %s236_s17 = scalar_lea.sflag [#allocation3], %s235_s12  ;;  %s1604_s16 = int_to_ptr.vmem [resolvable:$true] %s246_s16 }
  0x48   : > { %s1310_s18 = scalar_lea.hbm %s1602_s14, 64  ;;  %p1312_p0 = pneg %p1606_p11 }
  0x49   : > { %p1311_p12 = scmp.ne.s32.totalorder %s1602_s14, %s1310_s18  ;;  %s1315_s13 = scalar_lea.hbm %s1782_s0, 128 }
  0x4a   : > { %p1316_p13 = scmp.lt.u32.totalorder %s1602_s14, %s1782_s0  ;;  %p1317_p6 = scmp.lt.u32.totalorder %s1315_s13, %s1310_s18 }
  0x4b   : > { %p1313_p2 = pnand %p1312_p0, %p1311_p12  ;;  %p1319_p3 = scmp.lt.u32.totalorder %s1310_s18, %s1602_s14 }
  0x4c   : > { %p1318_p10 = por %p1317_p6, %p1316_p13 }
  0x4d   : > { %p1314_p1 = pneg %p1313_p2 }
  0x4e   : > { %p1320_p7 = por %p1319_p3, %p1318_p10 }
  0x50   : > { %p1321_p9 = pnand %p1320_p7, %p1314_p1 }
  0x52   : > { %1324 = shalt.err (!%p1321_p9)
}
  0x53   : > { %s1325_s12 = scalar_lea.vmem %s1604_s16, 64  ;;  %s1416_s20 = smov [#allocation2]  }
  0x54   : > { %p1326_p12 = scmp.ne.s32.totalorder %s1604_s16, %s1325_s12  ;;  %s1330_s15 = sshll.u32 %s1416_s20, 4  ;;  %s1331_s15 = int_to_ptr.vmem [resolvable:$false] %s1330_s15 }
  0x55   : > { %s1332_s8 = scalar_lea.vmem %s1331_s15, 128  ;;  %p1333_p4 = scmp.lt.s32.totalorder %s1604_s16, %s1331_s15 }
  0x56   : > { %p1328_p2 = pnand %p1326_p12, %p1312_p0  ;;  %p1334_p13 = scmp.lt.s32.totalorder %s1332_s8, %s1325_s12 }
  0x58   : > { %p1329_p5 = pneg %p1328_p2  ;;  %p1335_p6 = por %p1334_p13, %p1333_p4 }
  0x5a   : > { %p1336_p10 = pnand %p1335_p6, %p1329_p5 }
  0x5c   : > { %1339 = shalt.err (!%p1336_p10)
}
  0x5d   : > { %1171 = dma.hbm_to_vmem [thread:$0]  (!%p1606_p11), %s1602_s14, 64, %s1604_s16, %s236_s17  }
  0x5e   : > { %261 = sbr.rel (%p1509_p8) target bundleno = 1443 (0x5a3), region = 44  ;;  %s1638_s18 = sand.u32 (!%p1509_p8), 1, %s1402_s22  }
  0x5f   : > { %s1038_s30 = sshll.u32 (!%p1509_p8), %s1638_s18, 2  ;;  %s264_s13 = scalar_lea.sflag (!%p1509_p8), [#allocation3], %s1638_s18 }
  0x60   : > { %s267_s10 = scalar_lea.vmem (!%p1509_p8), [#allocation2], %s1038_s30  ;;  %p1799_p4 = scmp.ne.s32.totalorder (!%p1509_p8), %s1792_s27, 0 }
  0x65   : > { %1385 = dma.done.wait (%p1799_p4), %s264_s13, 64  }
  0x66   : > { %1387 = vsyncadd (%p1799_p4), %s264_s13, 4294967232  ;;  %p1800_p5 = scmp.eq.s32.totalorder %s1490_s25, 0 }
  0x68   : > { %1389 = dma.done.wait (%p1800_p5), [#allocation6], 512   ;;  %p1801_p8 = pmov %p1800_p5 }
  0x69   : > { %v1417_v0 = vmov 0.0   ;;  %vm1418_vm0 = vmmov 0   ;;  %v1234_v1 = vld [vmem:[#allocation5] sm:$0xff]   ;;  %v1235_v2 = vld [vmem:[#allocation5 + $0x8] sm:$0xff]   ;;  %v311_v3 = vld [vmem:[%s267_s10] sm:$0xf] }
  0x6a   : > { %1391 = vsyncadd (%p1801_p8), [#allocation6], 4294966784  ;;  %1085 = vmatprep.subr.bf16.mxu0 %v1417_v0  ;;  %1089 = vmatprep.mubr.msk.bf16.mxu0 %vm1418_vm0, %v1417_v0  ;;  %vm335_vm1 = vcmask 261120   ;;  %v1042_v4 = vld [vmem:[%s1784_s2] ss:$0 sm:$0xff]  ;;  %s1419_s14 = smov 96  }
  0x6b   : > { %1093 = vmatprep.subr.bf16.mxu1 %v1417_v0  ;;  %1095 = vmatprep.mubr.msk.bf16.mxu1 %vm1418_vm0, %v1417_v0  ;;  %s1420_s16 = smov 120   ;;  %s1421_s7 = smov 88   ;;  %vm392_vm2 = vcmask 64512   ;;  %vm454_vm3 = vcmask 1043456   ;;  %vm844_vm4 = vcmask 130048   ;;  %vm846_vm5 = vcmask 195584  }
  0x6c   : > { %1086 = vmatpush3.bf16.msra.mxu0 %v1234_v1  ;;  %s1422_s17 = smov 80   ;;  %s1423_s19 = smov 112   ;;  %vm916_vm6 = vcmask 257024  }
  0x6d   : > { %1087 = vmatprep.subr.bf16.mxu0 %v1417_v0  ;;  %s1424_s12 = smov 72   ;;  %s1425_s20 = smov 104  }
  0x6e   : > { %p307_p11 = scmp.lt.s32.totalorder %s1490_s25, 1  ;;  %s1426_s27 = smov 56  }
  0x6f   : > { %s1427_s29 = smov 64   ;;  %s306_s8 = scalar_lea.vmem [#allocation8], %s1038_s30 }
  0x70   : > { %1088 = vmatpush3.bf16.msra.mxu0 %v1235_v2  ;;  %s308_s15 = scalar_select %p307_p11, %s1490_s25, 1 }
  0x71   : > { %1099 = vmatprep.subr.bf16.mxu0 %v1417_v0  ;;  %s932_s13 = sshll.u32 %s306_s8, 4  ;;  %p1802_p1 = scmp.ne.s32.totalorder %s1797_s9, 0  ;;  %s1740_s13 = int_to_ptr.vmem [resolvable:$true] %s932_s13 }
  0x72   : > { %s309_s10 = scalar_lea.vmem %s1787_s5, %s308_s15  ;;  %s1060_s15 = sshll.u32 %s1490_s25, 6 }
  0x73   : > { %1090 = vmatmul.mubr.msk.bf16.vlgmr.msra.gmra.mrb[0].mxu0 %vm335_vm1, %v311_v3  ;;  %v1046_v24 = vld [vmem:[%s309_s10] ss:$0 sm:$0xff]  ;;  %s919_s25 = scalar_lea.sflag [#allocation4], %s1638_s18  ;;  %s1340_s30 = scalar_lea.vmem %s1740_s13, 64 }
  0x74   : > { %1101 = vmatprep.mubr.msk.bf16.mxu0 %vm1418_vm0, %v1417_v0  ;;  %p1341_p0 = scmp.ne.s32.totalorder %s1740_s13, %s1340_s30 }
  0x76   : > { %p1342_p3 = pnand %p1341_p0, %p1802_p1 }
  0x78   : > { %p1343_p7 = pneg %p1342_p3 }
 0x146   : > { %v373_v5 = vpop.f32.mrb[0].mxu0 }
 0x147   : > { %v374_v6 = vadd.f32 %v1042_v4, %v373_v5  ;;  %v1091_v7 = vpop.f32.mrb[1].mxu0 }
 0x148   : > { %v376_v8 = vpop.f32.mrb[2].mxu0 }
 0x149   : > { %v380_v9 = vmul.f32 0.35355338, %v374_v6  ;;  %v1666_v10 = vpack.c.bf16 %v374_v6, %v374_v6  ;;  %v1092_v11 = vpop.f32.mrb[3].mxu0 }
 0x14b   : > { %v381_v12 = vpack.c.bf16 %v380_v9, %v380_v9  ;;  %390 = vrot.lane.b32.xlu0 %v1666_v10, %s1419_s14  ;;  %s1428_s14 = smov 40  }
 0x14d   : > { %501 = vrot.lane.b32.xlu1 %v381_v12, %s1420_s16  ;;  %s1429_s16 = smov 48  }
 0x14f   : > { %503 = vrot.lane.b32.xlu0 %v1666_v10, %s1421_s7  ;;  %s1430_s7 = smov 8  }
 0x151   : > { %613 = vrot.lane.b32.xlu1 %v1666_v10, %s1422_s17  ;;  %s1431_s17 = smov 16  }
 0x153   : > { %611 = vrot.lane.b32.xlu0 %v381_v12, %s1423_s19  ;;  %s1432_s19 = smov 24  }
 0x155   : > { %723 = vrot.lane.b32.xlu1 %v1666_v10, %s1424_s12 }
 0x157   : > { %721 = vrot.lane.b32.xlu0 %v381_v12, %s1425_s20 }
 0x1bd   : > { %v391_v13 = vpop.permute.xlu0 %390 }
 0x1be   : > { %v397_v14 = vsel %vm392_vm2, %v391_v13, 0 }
 0x1bf   : > { %1094 = vmatpush3.bf16.xpose.msra.mxu1 %v397_v14  ;;  %v502_v16 = vpop.permute.xlu1 %501 }
 0x1c0   : > { %1105 = vmatprep.subr.bf16.mxu1 %v1417_v0 }
 0x1c1   : > { %v504_v15 = vpop.permute.xlu0 %503 }
 0x1c2   : > { %v509_v17 = vsel %vm392_vm2, %v504_v15, 0 }
 0x1c3   : > { %v614_v18 = vpop.permute.xlu1 %613 }
 0x1c4   : > { %v619_v19 = vsel %vm392_vm2, %v614_v18, 0 }
 0x1c5   : > { %v612_v21 = vpop.permute.xlu0 %611 }
 0x1c6   : > { %1096 = vmatmul.mubr.msk.bf16.vlgmr.msra.gmra.mrb[0].mxu1 %vm392_vm2, %v381_v12 }
 0x1c7   : > { %1106 = vmatpush3.bf16.xpose.msra.mxu1 %v509_v17  ;;  %1107 = vmatprep.mubr.msk.bf16.mxu1 %vm1418_vm0, %v1417_v0  ;;  %v724_v20 = vpop.permute.xlu1 %723 }
 0x1c8   : > { %1117 = vmatprep.subr.bf16.mxu1 %v1417_v0  ;;  %v729_v22 = vsel %vm392_vm2, %v724_v20, 0 }
 0x1c9   : > { %v722_v23 = vpop.permute.xlu0 %721 }
 0x1ce   : > { %1108 = vmatmul.mubr.msk.bf16.vlgmr.msra.gmra.mrb[4].mxu1 %vm392_vm2, %v502_v16 }
 0x1cf   : > { %1118 = vmatpush3.bf16.xpose.msra.mxu1 %v619_v19  ;;  %1119 = vmatprep.mubr.msk.bf16.mxu1 %vm1418_vm0, %v1417_v0 }
 0x1d0   : > { %1129 = vmatprep.subr.bf16.mxu1 %v1417_v0 }
 0x1d6   : > { %1120 = vmatmul.mubr.msk.bf16.vlgmr.msra.gmra.mrb[8].mxu1 %vm392_vm2, %v612_v21 }
 0x1d7   : > { %1130 = vmatpush3.bf16.xpose.msra.mxu1 %v729_v22  ;;  %1131 = vmatprep.mubr.msk.bf16.mxu1 %vm1418_vm0, %v1417_v0 }
 0x1d8   : > { %1141 = vmatprep.subr.bf16.mxu1 %v1417_v0 }
 0x1de   : > { %1132 = vmatmul.mubr.msk.bf16.vlgmr.msra.gmra.mrb[12].mxu1 %vm392_vm2, %v722_v23 }
 0x1df   : > { %1145 = vmatprep.mubr.msk.bf16.mxu1 %vm1418_vm0, %v1417_v0 }
 0x299   : > { %v433_v25 = vpop.f32.mrb[0].mxu1 }
 0x29a   : > { %v434_v26 = vadd.f32 %v1046_v24, %v433_v25  ;;  %v1097_v27 = vpop.f32.mrb[1].mxu1 }
 0x29b   : > { %v436_v28 = vpop.f32.mrb[2].mxu1 }
 0x29c   : > { %v1098_v29 = vpop.f32.mrb[3].mxu1  ;;  %v439_v30 = vsel %vm392_vm2, %v434_v26, -inf }
 0x29d   : > { %440 = vmax.xlane.f32.xlu1 %v439_v30  ;;  %v1236_v30 = vld [vmem:[#allocation7] sm:$0xff]  }
 0x29e   : > { %1142 = vmatpush3.bf16.msra.mxu1 %v1236_v30 }
 0x29f   : > { %1143 = vmatprep.subr.bf16.mxu1 %v1417_v0 }
 0x2a1   : > { %v545_v31 = vpop.f32.mrb[4].mxu1 }
 0x2a2   : > { %v546_v32 = vadd.f32 %v1046_v24, %v545_v31  ;;  %v1109_v33 = vpop.f32.mrb[5].mxu1 }
 0x2a3   : > { %v548_v34 = vpop.f32.mrb[6].mxu1 }
 0x2a4   : > { %v1110_v35 = vpop.f32.mrb[7].mxu1  ;;  %v551_v36 = vsel %vm392_vm2, %v546_v32, -inf }
 0x2a5   : > { %552 = vmax.xlane.f32.xlu0 %v551_v36 }
 0x2a9   : > { %v655_v37 = vpop.f32.mrb[8].mxu1 }
 0x2aa   : > { %v656_v38 = vadd.f32 %v1046_v24, %v655_v37  ;;  %v1121_v39 = vpop.f32.mrb[9].mxu1 }
 0x2ab   : > { %v658_v40 = vpop.f32.mrb[10].mxu1 }
 0x2ac   : > { %v1122_v41 = vpop.f32.mrb[11].mxu1  ;;  %v661_v42 = vsel %vm392_vm2, %v656_v38, -inf }
 0x2ad   : > { %662 = vmax.xlane.f32.xlu0 %v661_v42 }
 0x2ae   : > { %561 = vrot.lane.b32.xlu1 %v1666_v10, %s1426_s27 }
 0x2b1   : > { %v765_v43 = vpop.f32.mrb[12].mxu1 }
 0x2b2   : > { %v1133_v44 = vpop.f32.mrb[13].mxu1  ;;  %v766_v47 = vadd.f32 %v1046_v24, %v765_v43 }
 0x2b3   : > { %v768_v45 = vpop.f32.mrb[14].mxu1 }
 0x2b4   : > { %v1134_v46 = vpop.f32.mrb[15].mxu1  ;;  %v771_v48 = vsel %vm392_vm2, %v766_v47, -inf }
 0x2c3   : > { %449 = vrot.lane.b32.xlu0 %v1666_v10, %s1427_s29  ;;  %s1738_s29 = scalar_lea.hbm %s1788_s6, %s1060_s15 }
 0x2c7   : > { %781 = vrot.lane.b32.xlu0 %v1666_v10, %s1428_s14  ;;  %s1433_s14 = smov [#allocation8]  }
 0x2d2   : > { %772 = vmax.xlane.f32.xlu1 %v771_v48 }
 0x2e3   : > { %671 = vrot.lane.b32.xlu1 %v1666_v10, %s1429_s16  ;;  %s1344_s16 = sshll.u32 %s1433_s14, 4  ;;  %s1345_s16 = int_to_ptr.vmem [resolvable:$false] %s1344_s16 }
 0x2e4   : > { %p1347_p9 = scmp.lt.s32.totalorder %s1740_s13, %s1345_s16 }
 0x32a   : > { %v441_v49 = vpop.xlane.xlu1 %440 }
 0x32b   : > { %v442_v50 = vsub.f32 %v434_v26, %v441_v49 }
 0x32d   : > { %v443_v51 = vmul.f32 1.442695, %v442_v50 }
 0x32e   : > { %v562_v61 = vpop.permute.xlu1 %561 }
 0x32f   : > { %1238 = vpow2.f32 %v443_v51  ;;  %v567_v2 = vsel %vm454_vm3, %v562_v61, 0 }
 0x332   : > { %v553_v52 = vpop.xlane.xlu0 %552 }
 0x333   : > { %v554_v53 = vsub.f32 %v546_v32, %v553_v52  ;;  %v1237_v32 = vld [vmem:[#allocation7 + $0x8] sm:$0xff]  }
 0x334   : > { %1144 = vmatpush3.bf16.msra.mxu1 %v1237_v32 }
 0x335   : > { %v555_v54 = vmul.f32 1.442695, %v554_v53 }
 0x337   : > { %1240 = vpow2.f32 %v555_v54  ;;  %v1055_v54 = vld [vmem:[%s1786_s4] ss:$0 sm:$0xff] }
 0x339   : > { %v1239_v58 = vpop.eup %1238 }
 0x33a   : > { %v663_v55 = vpop.xlane.xlu0 %662  ;;  %v448_v63 = vpack.c.bf16 %v1239_v58, %v1239_v58  ;;  %v445_v3 = vsel %vm392_vm2, %v1239_v58, 0.0 }
 0x33b   : > { %v664_v56 = vsub.f32 %v656_v38, %v663_v55 }
 0x33d   : > { %v665_v57 = vmul.f32 1.442695, %v664_v56 }
 0x33e   : > { %v450_v59 = vpop.permute.xlu0 %449 }
 0x33f   : > { %1242 = vpow2.f32 %v665_v57  ;;  %v456_v60 = vsel %vm454_vm3, %v450_v59, 0 }
 0x340   : > { %1100 = vmatpush3.bf16.msra.mxu0 %v456_v60 }
 0x341   : > { %v1241_v62 = vpop.eup %1240  ;;  %1111 = vmatprep.subr.bf16.mxu0 %v1417_v0 }
 0x342   : > { %v557_v1 = vsel %vm392_vm2, %v1241_v62, 0.0  ;;  %v560_v5 = vpack.c.bf16 %v1241_v62, %v1241_v62  ;;  %v782_v12 = vpop.permute.xlu0 %781 }
 0x343   : > { %1102 = vmatmul.mubr.msk.bf16.vlgmr.msra.gmra.mrb[4].mxu0 %vm392_vm2, %v448_v63  ;;  %558 = vadd.xlane.f32.xlu1 %v557_v1  ;;  %v787_v14 = vsel %vm454_vm3, %v782_v12, 0 }
 0x344   : > { %1112 = vmatpush3.bf16.msra.mxu0 %v567_v2  ;;  %1113 = vmatprep.mubr.msk.bf16.mxu0 %vm1418_vm0, %v1417_v0 }
 0x345   : > { %1123 = vmatprep.subr.bf16.mxu0 %v1417_v0 }
 0x347   : > { %446 = vadd.xlane.f32.xlu1 %v445_v3 }
 0x349   : > { %v1243_v4 = vpop.eup %1242 }
 0x34a   : > { %v667_v6 = vsel %vm392_vm2, %v1243_v4, 0.0  ;;  %v670_v13 = vpack.c.bf16 %v1243_v4, %v1243_v4 }
 0x34b   : > { %668 = vadd.xlane.f32.xlu0 %v667_v6  ;;  %1114 = vmatmul.mubr.msk.bf16.vlgmr.msra.gmra.mrb[8].mxu0 %vm392_vm2, %v560_v5 }
 0x34c   : > { %1125 = vmatprep.mubr.msk.bf16.mxu0 %vm1418_vm0, %v1417_v0 }
 0x35f   : > { %v773_v7 = vpop.xlane.xlu1 %772 }
 0x360   : > { %v774_v8 = vsub.f32 %v766_v47, %v773_v7 }
 0x362   : > { %v775_v9 = vmul.f32 1.442695, %v774_v8 }
 0x363   : > { %v672_v10 = vpop.permute.xlu1 %671 }
 0x364   : > { %1244 = vpow2.f32 %v775_v9  ;;  %v677_v11 = vsel %vm454_vm3, %v672_v10, 0 }
 0x365   : > { %1124 = vmatpush3.bf16.msra.mxu0 %v677_v11 }
 0x366   : > { %1135 = vmatprep.subr.bf16.mxu0 %v1417_v0 }
 0x368   : > { %1126 = vmatmul.mubr.msk.bf16.vlgmr.msra.gmra.mrb[12].mxu0 %vm392_vm2, %v670_v13 }
 0x369   : > { %1136 = vmatpush3.bf16.msra.mxu0 %v787_v14  ;;  %1137 = vmatprep.mubr.msk.bf16.mxu0 %vm1418_vm0, %v1417_v0 }
 0x36e   : > { %v1245_v15 = vpop.eup %1244 }
 0x36f   : > { %v777_v16 = vsel %vm392_vm2, %v1245_v15, 0.0  ;;  %v780_v17 = vpack.c.bf16 %v1245_v15, %v1245_v15 }
 0x370   : > { %778 = vadd.xlane.f32.xlu0 %v777_v16 }
 0x371   : > { %1138 = vmatmul.mubr.msk.bf16.vlgmr.msra.gmra.mrb[16].mxu0 %vm392_vm2, %v780_v17 }
 0x3d0   : > { %v559_v18 = vpop.xlane.xlu1 %558 }
 0x3d1   : > { %1246 = vrcp.f32 %v559_v18 }
 0x3d4   : > { %v447_v44 = vpop.xlane.xlu1 %446 }
 0x3d8   : > { %v669_v29 = vpop.xlane.xlu0 %668 }
 0x3d9   : > { %1248 = vrcp.f32 %v669_v29 }
 0x3db   : > { %v1247_v23 = vpop.eup %1246 }
 0x3e3   : > { %v1249_v33 = vpop.eup %1248 }
 0x3fd   : > { %v779_v31 = vpop.xlane.xlu0 %778 }
 0x3fe   : > { %1250 = vrcp.f32 %v779_v31 }
 0x3ff   : > { %1252 = vrcp.f32 %v447_v44 }
 0x408   : > { %v1251_v39 = vpop.eup %1250 }
 0x409   : > { %v1253_v45 = vpop.eup %1252 }
 0x416   : > { %v492_v19 = vpop.f32.mrb[4].mxu0 }
 0x417   : > { %v1103_v20 = vpop.f32.mrb[5].mxu0  ;;  %v499_v48 = vmul.f32 %v1253_v45, %v492_v19 }
 0x418   : > { %v495_v21 = vpop.f32.mrb[6].mxu0 }
 0x419   : > { %v1104_v22 = vpop.f32.mrb[7].mxu0 }
 0x41e   : > { %v603_v24 = vpop.f32.mrb[8].mxu0 }
 0x41f   : > { %v610_v25 = vmul.f32 %v1247_v23, %v603_v24  ;;  %v1115_v26 = vpop.f32.mrb[9].mxu0 }
 0x420   : > { %v606_v27 = vpop.f32.mrb[10].mxu0 }
 0x421   : > { %832 = vrot.lane.b32.xlu0 %v610_v25, %s1430_s7  ;;  %v1116_v28 = vpop.f32.mrb[11].mxu0  ;;  %s1346_s7 = scalar_lea.vmem %s1345_s16, 128 }
 0x422   : > { %p1348_p12 = scmp.lt.s32.totalorder %s1346_s7, %s1340_s30 }
 0x424   : > { %p1349_p2 = por %p1348_p12, %p1347_p9 }
 0x426   : > { %p1350_p13 = pnand %p1349_p2, %p1343_p7 }
 0x43b   : > { %v713_v34 = vpop.f32.mrb[12].mxu0 }
 0x43c   : > { %v720_v35 = vmul.f32 %v1249_v33, %v713_v34  ;;  %v1127_v36 = vpop.f32.mrb[13].mxu0 }
 0x43d   : > { %v716_v37 = vpop.f32.mrb[14].mxu0 }
 0x43e   : > { %836 = vrot.lane.b32.xlu1 %v720_v35, %s1431_s17  ;;  %v1128_v38 = vpop.f32.mrb[15].mxu0 }
 0x444   : > { %v823_v40 = vpop.f32.mrb[16].mxu0 }
 0x445   : > { %v830_v41 = vmul.f32 %v1251_v39, %v823_v40  ;;  %v1139_v42 = vpop.f32.mrb[17].mxu0 }
 0x446   : > { %v826_v43 = vpop.f32.mrb[18].mxu0 }
 0x447   : > { %840 = vrot.lane.b32.xlu1 %v830_v41, %s1432_s19  ;;  %v1140_v0 = vpop.f32.mrb[19].mxu0 }
 0x493   : > { %v833_v46 = vpop.permute.xlu0 %832 }
 0x494   : > { %v843_v49 = vsel %vm392_vm2, %v499_v48, %v833_v46 }
 0x4b0   : > { %v837_v47 = vpop.permute.xlu1 %836 }
 0x4b1   : > { %v845_v50 = vsel %vm844_vm4, %v843_v49, %v837_v47 }
 0x4b9   : > { %v841_v51 = vpop.permute.xlu1 %840 }
 0x4ba   : > { %v847_v52 = vsel %vm846_vm5, %v845_v50, %v841_v51 }
 0x4bb   : > { %v848_v53 = vpack.c.bf16 %v847_v52, %v847_v52 }
 0x4bd   : > { %1146 = vmatmul.mubr.msk.bf16.vlgmr.msra.gmra.mrb[16].mxu1 %vm335_vm1, %v848_v53 }
 0x590   : > { %v909_v55 = vpop.f32.mrb[16].mxu1 }
 0x591   : > { %v910_v56 = vadd.f32 %v1055_v54, %v909_v55  ;;  %v1147_v57 = vpop.f32.mrb[17].mxu1 }
 0x592   : > { %v912_v58 = vpop.f32.mrb[18].mxu1 }
 0x593   : > { %v915_v59 = vpack.c.bf16 %v910_v56, %v910_v56  ;;  %v1148_v60 = vpop.f32.mrb[19].mxu1 }
 0x595   : > { %917 = vst.msk [vmem:[%s306_s8] sm:$0xf] %vm916_vm6, %v915_v59 }
 0x596   : > { %1353 = shalt.err (!%p1350_p13)
}
 0x597   : > { %s1354_s18 = scalar_lea.hbm %s1738_s29, 64  ;;  %s1358_s12 = scalar_lea.hbm %s1788_s6, 128 }
 0x598   : > { %p1355_p6 = scmp.ne.s32.totalorder %s1738_s29, %s1354_s18  ;;  %p1359_p5 = scmp.lt.u32.totalorder %s1738_s29, %s1788_s6 }
 0x599   : > { %p1360_p8 = scmp.lt.u32.totalorder %s1358_s12, %s1354_s18  ;;  %p1362_p0 = scmp.lt.u32.totalorder %s1354_s18, %s1738_s29 }
 0x59a   : > { %p1356_p10 = pnand %p1355_p6, %p1802_p1 }
 0x59b   : > { %p1361_p11 = por %p1360_p8, %p1359_p5 }
 0x59c   : > { %p1357_p4 = pneg %p1356_p10 }
 0x59d   : > { %p1363_p3 = por %p1362_p0, %p1361_p11 }
 0x59f   : > { %p1364_p7 = pnand %p1363_p3, %p1357_p4 }
 0x5a1   : > { %1367 = shalt.err (!%p1364_p7)
}
 0x5a2   : > { %1159 = dma.vmem_to_hbm [thread:$0]  (%p1802_p1), %s1740_s13, 64, %s1738_s29, %s919_s25  }
 0x5a3 PF: > { %s944_s8 = sand.u32 1, %s1398_s21   ;;  %p1803_p9 = scmp.ne.s32.totalorder %s1793_s28, 0 }
 0x5a4   : > { %p1804_p12 = scmp.ge.s32.totalorder %s1410_s24, 2  ;;  %s945_s10 = scalar_lea.sflag [#allocation4], %s944_s8 }
 0x5a6   : > { %p1173_p2 = pnand %p1804_p12, %p1803_p9 }
 0x5a8   : > { %1393 = dma.done.wait (!%p1173_p2), %s945_s10, 64  }
 0x5a9   : > { %1395 = vsyncadd (!%p1173_p2), %s945_s10, 4294967232  ;;  %p20_p13 = scmp.ge.s32.totalorder %s1579_s26, 4   ;;  %s1805_s21 = smov %s1402_s22 }
 0x5aa   : > { %s1806_s22 = smov %s1406_s23  ;;  %s1807_s23 = smov %s1595_s11 }
 0x5ab   : > { %s1808_s24 = smov %s1579_s26  ;;  %22 = sbr.rel (!%p20_p13) target bundleno = 6 (0x6), region = 100 }
 0x5b2   :  { %950 = vsyncpa [#allocation3], 1 }
 0x5b3   :  { %952 = vsyncpa [#allocation3 + $0x1], 1 }
 0x5b4   :  { %953 = vsyncpa [#allocation6], 1 }
 0x5b5   :  { %954 = vsyncpa [#allocation4], 1 }
 0x5b6   :  { %956 = vsyncpa [#allocation4 + $0x1], 1 }

</bundles_post_ra>
